<compile_context>
chip_gen: v7x
topology: tpu7x:2x2x1
jax: 0.10.0
libtpu: 0.0.40
codegen_flags: <defaults>
</compile_context>

<pallas_src>
import functools

import jax
import jax.numpy as jnp
from jax.experimental import pallas as pl
from jax.experimental.pallas import tpu as pltpu

_LANE = 128
_SUBLANE = 8


def _round_up(x, m):
    return ((x + m - 1) // m) * m


def _tpu_vmem_and_cores():
    """Best-effort device query; safe fallbacks if unavailable."""
    vmem_cap = 64 * 1024 * 1024   # conservative default (v7x per-TC VMEM)
    n_cores = 1                   # conservative default (v5e/v6e: 1 TC/chip)
    try:
        info = pltpu.get_tpu_info()
        cap = getattr(info, "vmem_capacity_bytes", None)
        if isinstance(cap, int) and cap > 0:
            vmem_cap = cap
        for attr in ("num_cores", "core_count", "num_tensorcores", "tensorcore_count"):
            v = getattr(info, attr, None)
            if isinstance(v, int) and v > 0:
                n_cores = v
                break
    except Exception:
        pass
    return vmem_cap, n_cores


def _flatten_head_kernel(x_ref, w_ref, b_ref, o_ref, *, compute_dtype):
    # Cast the native-dtype activation tile to the MXU compute dtype in VMEM
    # (avoids a separate wrapper-side HBM cast pass), accumulate in f32.
    x = x_ref[...].astype(compute_dtype)
    acc = jnp.dot(x, w_ref[...], preferred_element_type=jnp.float32)
    o_ref[...] = (acc + b_ref[...]).astype(o_ref.dtype)


def prepare_flatten_head_params(weight, bias, *, compute_dtype=jnp.bfloat16,
                                lane_multiple=_LANE):
    """One-time param prep (hoisted out of the hot path): transpose + lane-pad + cast.

    weight: [target_window, nf] (nn.Linear layout), bias: [target_window]
    Returns w_t: [nf, TW_pad] in compute_dtype, b2: [1, TW_pad] in f32.
    """
    target_window, nf = weight.shape
    tw_pad = _round_up(target_window, lane_multiple)
    w_t = weight.T.astype(compute_dtype)                        # [nf, TW]
    w_t = jnp.pad(w_t, ((0, 0), (0, tw_pad - target_window)))   # lane-dense pad
    b2 = jnp.pad(bias.astype(jnp.float32), (0, tw_pad - target_window))
    return w_t, b2.reshape(1, tw_pad)


def flatten_head_apply(x, w_t, b2, target_window, *, out_dtype=None):
    """x: [B, n_vars, d_model, patch_num]; w_t: [nf, TW_pad]; b2: [1, TW_pad]."""
    B, n_vars, d_model, patch_num = x.shape
    nf = d_model * patch_num
    assert w_t.shape[0] == nf, (w_t.shape, nf)
    tw_pad = w_t.shape[1]
    out_dtype = x.dtype if out_dtype is None else out_dtype

    # Flatten(start_dim=-2) == row-major merge of the trailing two dims:
    # a pure metadata reshape on contiguous data (no HBM pass, no dtype cast).
    M = B * n_vars
    x_flat = x.reshape(M, nf)

    x_isz = jnp.dtype(x.dtype).itemsize
    w_isz = jnp.dtype(w_t.dtype).itemsize
    o_isz = jnp.dtype(out_dtype).itemsize

    vmem_cap, n_cores = _tpu_vmem_and_cores()
    budget = max(16 * 1024 * 1024, min(vmem_cap // 2, 64 * 1024 * 1024))
    vmem_limit = min(vmem_cap * 3 // 4, budget + 32 * 1024 * 1024)

    w_bytes = nf * tw_pad * w_isz
    b_bytes = tw_pad * 4

    kernel = functools.partial(_flatten_head_kernel, compute_dtype=w_t.dtype)
    cost = pl.CostEstimate(
        flops=2 * M * nf * tw_pad,
        transcendentals=0,
        bytes_accessed=M * nf * x_isz + w_bytes + b_bytes + M * tw_pad * o_isz,
    )

    # ---- row tile: target MXU height, capped at the problem size ----
    m_cap = _round_up(M, _SUBLANE)
    tm = min(256, m_cap)

    # Resident-weight estimate: weight counted at 2x (conservative vs. pipelining
    # buffer allocation), x/out tiles double-buffered across row-grid steps.
    def resident_bytes(tm_):
        return (2 * (w_bytes + b_bytes)
                + 2 * (tm_ * nf * x_isz + tm_ * tw_pad * o_isz))

    if resident_bytes(_SUBLANE) <= budget:
        # ---- fully resident weight: 1-D grid over row tiles, weight loaded once ----
        while tm > _SUBLANE and resident_bytes(tm) > budget:
            tm = max(_SUBLANE, _round_up(tm // 2, _SUBLANE))
        # Only force >=2 row tiles when there is a second TensorCore to feed (v7x).
        if n_cores >= 2 and pl.cdiv(M, tm) == 1 and M > _SUBLANE:
            tm = max(_SUBLANE, _round_up(pl.cdiv(M, 2), _SUBLANE))

        grid = (pl.cdiv(M, tm),)
        in_specs = [
            pl.BlockSpec((tm, nf), lambda i: (i, 0)),
            pl.BlockSpec((nf, tw_pad), lambda i: (0, 0)),   # resident: 1 HBM load
            pl.BlockSpec((1, tw_pad), lambda i: (0, 0)),
        ]
        out_specs = pl.BlockSpec((tm, tw_pad), lambda i: (i, 0))
        dim_sem = ("parallel",)
    else:
        # ---- streaming fallback: N-tiled weight, pl.cdiv grids (no dropped cols) ----
        tn = min(tw_pad, 512)

        def stream_bytes(tm_, tn_):
            return (2 * (tm_ * nf * x_isz + tm_ * tn_ * o_isz + tn_ * 4)
                    + 3 * nf * tn_ * w_isz)

        while tn > _LANE and stream_bytes(tm, tn) > budget:
            tn = max(_LANE, _round_up(tn // 2, _LANE))
        while tm > _SUBLANE and stream_bytes(tm, tn) > budget:
            tm = max(_SUBLANE, _round_up(tm // 2, _SUBLANE))

        m_tiles = pl.cdiv(M, tm)
        n_tiles = pl.cdiv(tw_pad, tn)
        if M * nf * x_isz >= w_bytes:
            # x is the larger HBM operand: hold the x tile, stream weight tiles.
            grid = (m_tiles, n_tiles)
            in_specs = [
                pl.BlockSpec((tm, nf), lambda i, j: (i, 0)),
                pl.BlockSpec((nf, tn), lambda i, j: (0, j),
                             pipeline_mode=pl.Buffered(3)),
                pl.BlockSpec((1, tn), lambda i, j: (0, j)),
            ]
            out_specs = pl.BlockSpec((tm, tn), lambda i, j: (i, j))
        else:
            # weight is larger: hold the weight tile, stream x tiles.
            grid = (n_tiles, m_tiles)
            in_specs = [
                pl.BlockSpec((tm, nf), lambda j, i: (i, 0)),
                pl.BlockSpec((nf, tn), lambda j, i: (0, j)),
                pl.BlockSpec((1, tn), lambda j, i: (0, j)),
            ]
            out_specs = pl.BlockSpec((tm, tn), lambda j, i: (i, j))
        dim_sem = ("parallel", "parallel")

    out = pl.pallas_call(
        kernel,
        out_shape=jax.ShapeDtypeStruct((M, tw_pad), out_dtype),
        grid_spec=pltpu.PrefetchScalarGridSpec(
            num_scalar_prefetch=0,
            grid=grid,
            in_specs=in_specs,
            out_specs=out_specs,
        ),
        compiler_params=pltpu.CompilerParams(
            dimension_semantics=dim_sem,
            vmem_limit_bytes=int(vmem_limit),
        ),
        cost_estimate=cost,
    )(x_flat, w_t, b2)

    # Slice off the lane pad; Dropout(p=0) is the identity so nothing to do.
    return out[:, :target_window].reshape(B, n_vars, target_window)


def flatten_head(x, weight, bias, *, compute_dtype=jnp.bfloat16, out_dtype=None):
    """Convenience wrapper; in production call prepare_flatten_head_params once."""
    w_t, b2 = prepare_flatten_head_params(weight, bias, compute_dtype=compute_dtype)
    return flatten_head_apply(x, w_t, b2, weight.shape[0], out_dtype=out_dtype)


if __name__ == "__main__":
    # Small shapes consistent with the module: B=2, n_vars=4, d_model=16, patch_num=16
    # => nf = 256, target_window = 96 (lane-padded to 128 internally), head_dropout=0.
    B, n_vars, d_model, patch_num = 2, 4, 16, 16
    nf = d_model * patch_num
    target_window = 96

    key = jax.random.PRNGKey(0)
    kx, kw, kb = jax.random.split(key, 3)

    x = jax.random.normal(kx, (B, n_vars, d_model, patch_num), dtype=jnp.float32)
    bound = 1.0 / jnp.sqrt(jnp.float32(nf))
    weight = jax.random.uniform(kw, (target_window, nf), jnp.float32, -bound, bound)
    bias = jax.random.uniform(kb, (target_window,), jnp.float32, -bound, bound)

    # Hoisted one-time param prep (no per-call weight transpose in the hot path).
    w_t, b2 = prepare_flatten_head_params(weight, bias)
    y = flatten_head_apply(x, w_t, b2, target_window)
    jax.block_until_ready(y)

    # References: same bf16 compute precision as the kernel, and full f32.
    x_flat = x.reshape(B, n_vars, nf)
    y_ref_bf16 = (jnp.dot(x_flat.astype(jnp.bfloat16),
                          weight.T.astype(jnp.bfloat16),
                          preferred_element_type=jnp.float32) + bias).astype(x.dtype)
    y_ref_f32 = x_flat @ weight.T + bias

    assert y.shape == (B, n_vars, target_window)
    assert jnp.allclose(y, y_ref_bf16, atol=1e-2, rtol=1e-2)
    assert jnp.allclose(y, y_ref_f32, atol=5e-2, rtol=5e-2)

    print("KERNEL_OK")
</pallas_src>

<mosaic_0001>
module attributes {stable_mosaic.version = 11 : i64} {
  func.func @_flatten_head_kernel(%arg0: i32, %arg1: memref<8x256xf32, #tpu.memory_space<vmem>>, %arg2: memref<256x128xbf16, #tpu.memory_space<vmem>>, %arg3: memref<1x128xf32, #tpu.memory_space<vmem>>, %arg4: memref<8x128xf32, #tpu.memory_space<vmem>>) attributes {dimension_semantics = [#tpu.dimension_semantics<parallel>], iteration_bounds = array<i64: 1>, scalar_prefetch = 0 : i64, scratch_operands = 0 : i64, tpu.core_type = #tpu.core_type<tc>, window_params = [{transform_indices = @transform_0, window_bounds = array<i64: 8, 256>}, {pipeline_mode = #tpu.pipeline_mode<synchronous>, transform_indices = @transform_1, window_bounds = array<i64: 256, 128>}, {pipeline_mode = #tpu.pipeline_mode<synchronous>, transform_indices = @transform_2, window_bounds = array<i64: 1, 128>}, {transform_indices = @transform_3, window_bounds = array<i64: 8, 128>}]} {
    %c0 = arith.constant 0 : index
    %c0_0 = arith.constant 0 : index
    %0 = vector.load %arg1[%c0, %c0_0] : memref<8x256xf32, #tpu.memory_space<vmem>>, vector<8x256xf32>
    %1 = arith.truncf %0 : vector<8x256xf32> to vector<8x256xbf16>
    %c0_1 = arith.constant 0 : index
    %c0_2 = arith.constant 0 : index
    %2 = vector.load %arg2[%c0_1, %c0_2] : memref<256x128xbf16, #tpu.memory_space<vmem>>, vector<256x128xbf16>
    %cst = arith.constant dense<0.000000e+00> : vector<8x128xf32>
    %3 = tpu.matmul %1, %2, %cst {dimension_numbers = #tpu.dot_dimension_numbers<[1], [0], [0], [1], [0, 0, 1, 1], [], []>} : vector<8x256xbf16>, vector<256x128xbf16>, vector<8x128xf32> -> vector<8x128xf32>
    %c0_3 = arith.constant 0 : index
    %c0_4 = arith.constant 0 : index
    %4 = vector.load %arg3[%c0_3, %c0_4] : memref<1x128xf32, #tpu.memory_space<vmem>>, vector<1x128xf32>
    %5 = vector.broadcast %4 : vector<1x128xf32> to vector<8x128xf32>
    %6 = arith.addf %3, %5 : vector<8x128xf32>
    %c0_5 = arith.constant 0 : index
    %c0_6 = arith.constant 0 : index
    %7 = vector.load %arg4[%c0_5, %c0_6] : memref<8x128xf32, #tpu.memory_space<vmem>>, vector<8x128xf32>
    tpu.vector_store %arg4[%c0_5, %c0_6], %6 {strides = array<i32>} : memref<8x128xf32, #tpu.memory_space<vmem>>, vector<8x128xf32>,
    return
  }
  func.func @transform_0(%arg0: i32) -> (i32, i32) {
    %c0_i32 = arith.constant 0 : i32
    %c0_i32_0 = arith.constant 0 : i32
    return %arg0, %c0_i32 : i32, i32
  }
  func.func @transform_1(%arg0: i32) -> (i32, i32) {
    %c0_i32 = arith.constant 0 : i32
    %c0_i32_0 = arith.constant 0 : i32
    %c0_i32_1 = arith.constant 0 : i32
    return %c0_i32, %c0_i32_0 : i32, i32
  }
  func.func @transform_2(%arg0: i32) -> (i32, i32) {
    %c0_i32 = arith.constant 0 : i32
    %c0_i32_0 = arith.constant 0 : i32
    %c0_i32_1 = arith.constant 0 : i32
    return %c0_i32, %c0_i32_0 : i32, i32
  }
  func.func @transform_3(%arg0: i32) -> (i32, i32) {
    %c0_i32 = arith.constant 0 : i32
    %c0_i32_0 = arith.constant 0 : i32
    return %arg0, %c0_i32 : i32, i32
  }
}

</mosaic_0001>

<bundles_post_ra>
// kernel: tpu_custom_call.1
= control target key start
LH: loop header
LB: loop body
LE: loop exit
PB: predicated region body
PF: predicated region fallthrough
CT: control target
= control target key end

     0   :  { %8 = vsyncpa [#allocation3], 0  ;;  %s441_s0 = inlined_call_operand.hbm [shape: f32[8,256], index: 0, kind: input, shape index: {}]   ;;  %s442_s1 = inlined_call_operand.hbm [shape: bf16[256,128], index: 1, kind: input, shape index: {}]   ;;  %s443_s2 = inlined_call_operand.vmem [shape: f32[1,128], index: 2, kind: input, shape index: {}]   ;;  %s444_s3 = inlined_call_operand.hbm [shape: f32[8,128], index: 3, kind: output, shape index: {}]  }
   0x1   :  { %9 = vsyncpa [#allocation6], 0 }
   0x2   :  { %10 = vsyncpa [#allocation4], 0  ;;  %s370_s12 = smov [#allocation2]   ;;  %s371_s14 = smov [#allocation5]  }
   0x3   :  { %s17_s13 = sshll.u32 %s370_s12, 4  ;;  %s26_s15 = sshll.u32 %s371_s14, 4  ;;  %s18_s13 = int_to_ptr.vmem [resolvable:$true] %s17_s13  ;;  %s395_s15 = int_to_ptr.vmem [resolvable:$true] %s26_s15 }
   0x4   :  { %s298_s18 = scalar_lea.hbm %s441_s0, 256 }
   0x5   :  { %p299_p0 = scmp.ne.s32.totalorder %s441_s0, %s298_s18  ;;  %p302_p1 = scmp.lt.u32.totalorder %s298_s18, %s441_s0 }
   0x7   :  { %p304_p2 = pnand %p302_p1, %p299_p0 }
   0x9   :  { %307 = shalt.err (!%p304_p2)
}
   0xa   :  { %s308_s23 = scalar_lea.vmem %s18_s13, 256  ;;  %p313_p4 = scmp.lt.s32.totalorder %s18_s13, %s18_s13 }
   0xb   :  { %p309_p3 = scmp.ne.s32.totalorder %s18_s13, %s308_s23  ;;  %p314_p5 = scmp.lt.s32.totalorder %s308_s23, %s308_s23 }
   0xd   :  { %p315_p6 = por %p314_p5, %p313_p4 }
   0xf   :  { %p316_p7 = pnand %p315_p6, %p309_p3 }
  0x11   :  { %319 = shalt.err (!%p316_p7)
}
  0x12   :  { %20 = dma.hbm_to_vmem [thread:$0]  %s441_s0, 256, %s18_s13, [#allocation3]  }
  0x13   :  { %s320_s28 = scalar_lea.hbm %s442_s1, 2048 }
  0x14   :  { %p321_p8 = scmp.ne.s32.totalorder %s442_s1, %s320_s28  ;;  %p324_p9 = scmp.lt.u32.totalorder %s320_s28, %s442_s1 }
  0x16   :  { %p326_p10 = pnand %p324_p9, %p321_p8 }
  0x18   :  { %329 = shalt.err (!%p326_p10)
}
  0x19   :  { %s330_s6 = scalar_lea.vmem %s395_s15, 2048  ;;  %p335_p12 = scmp.lt.s32.totalorder %s395_s15, %s395_s15 }
  0x1a   :  { %p331_p11 = scmp.ne.s32.totalorder %s395_s15, %s330_s6  ;;  %p336_p13 = scmp.lt.s32.totalorder %s330_s6, %s330_s6 }
  0x1c   :  { %p337_p0 = por %p336_p13, %p335_p12 }
  0x1e   :  { %p338_p1 = pnand %p337_p0, %p331_p11 }
  0x20   :  { %341 = shalt.err (!%p338_p1)
}
  0x21   :  { %s372_s0 = smov 64   ;;  %s373_s7 = smov 4  }
  0x22   :  { %32 = dma.hbm_to_vmem [thread:$0]  %s442_s1, 2048, %s395_s15, [#allocation6], %s372_s0, %s372_s0, %s373_s7  }
  0x23   :  { %364 = dma.done.wait [#allocation3], 256  }
  0x24   :  { %365 = vsyncadd [#allocation3], 4294967040 }
  0x25   :  { %366 = dma.done.wait [#allocation6], 2048  }
  0x26   :  { %367 = vsyncadd [#allocation6], 4294965248  ;;  %v282_v0 = vld [vmem:[#allocation5 + $0x40] sm:$0xff]   ;;  %v284_v2 = vld [vmem:[#allocation5 + $0x48] sm:$0xff]   ;;  %s374_s11 = smov [#allocation7]  }
  0x27   :  { %v283_v1 = vld [vmem:[#allocation5] sm:$0xff]   ;;  %255 = vmatprep.subr.bf16.mxu0 %v282_v0  ;;  %v285_v3 = vld [vmem:[#allocation5 + $0x8] sm:$0xff]   ;;  %v286_v4 = vld [vmem:[#allocation5 + $0x50] sm:$0xff]   ;;  %s228_s12 = sshll.u32 %s374_s11, 4  ;;  %s229_s12 = int_to_ptr.vmem [resolvable:$true] %s228_s12 }
  0x28   :  { %256 = vmatpush3.bf16.msra.mxu0 %v283_v1  ;;  %v287_v5 = vld [vmem:[#allocation5 + $0x10] sm:$0xff]   ;;  %v288_v6 = vld [vmem:[#allocation5 + $0x58] sm:$0xff]   ;;  %v290_v8 = vld [vmem:[#allocation5 + $0x60] sm:$0xff]   ;;  %s342_s13 = scalar_lea.vmem %s229_s12, 128  ;;  %p347_p3 = scmp.lt.s32.totalorder %s229_s12, %s229_s12 }
  0x29   :  { %257 = vmatprep.subr.bf16.mxu0 %v284_v2  ;;  %v289_v7 = vld [vmem:[#allocation5 + $0x18] sm:$0xff]   ;;  %v291_v9 = vld [vmem:[#allocation5 + $0x20] sm:$0xff]   ;;  %v292_v10 = vld [vmem:[#allocation5 + $0x68] sm:$0xff]   ;;  %p343_p2 = scmp.ne.s32.totalorder %s229_s12, %s342_s13  ;;  %p348_p4 = scmp.lt.s32.totalorder %s342_s13, %s342_s13 }
  0x2a   :  { %v43_v11 = vld [vmem:[#allocation2 + $0x8] sm:$0xff]  ;;  %v293_v13 = vld [vmem:[#allocation5 + $0x28] sm:$0xff]   ;;  %v294_v14 = vld [vmem:[#allocation5 + $0x70] sm:$0xff]  }
  0x2b   :  { %v45_v12 = vpack.c.bf16 %v43_v11, %v43_v11  ;;  %v295_v15 = vld [vmem:[#allocation5 + $0x30] sm:$0xff]   ;;  %v296_v16 = vld [vmem:[#allocation5 + $0x78] sm:$0xff]   ;;  %p349_p5 = por %p348_p4, %p347_p3 }
  0x2c   :  { %258 = vmatpush3.bf16.msra.mxu0 %v285_v3  ;;  %v297_v17 = vld [vmem:[#allocation5 + $0x38] sm:$0xff]   ;;  %v42_v18 = vld [vmem:[#allocation2] sm:$0xff] }
  0x2d   :  { %259 = vmatprep.subr.bf16.mxu0 %v286_v4  ;;  %213 = vmatprep.mubr.bf16.mxu0 %v45_v12  ;;  %v44_v19 = vpack.c.bf16 %v42_v18, %v42_v18  ;;  %v238_v21 = vld [vmem:[%s443_s2] ss:$0 sm:$0xff]  ;;  %p350_p6 = pnand %p349_p5, %p343_p2 }
  0x30   :  { %260 = vmatpush3.bf16.msra.mxu0 %v287_v5 }
  0x31   :  { %261 = vmatprep.subr.bf16.mxu0 %v288_v6 }
  0x34   :  { %262 = vmatpush3.bf16.msra.mxu0 %v289_v7 }
  0x35   :  { %263 = vmatprep.subr.bf16.mxu0 %v290_v8 }
  0x38   :  { %264 = vmatpush3.bf16.msra.mxu0 %v291_v9 }
  0x39   :  { %265 = vmatprep.subr.bf16.mxu0 %v292_v10 }
  0x3c   :  { %266 = vmatpush3.bf16.msra.mxu0 %v293_v13 }
  0x3d   :  { %267 = vmatprep.subr.bf16.mxu0 %v294_v14 }
  0x40   :  { %268 = vmatpush3.bf16.msra.mxu0 %v295_v15 }
  0x41   :  { %269 = vmatprep.subr.bf16.mxu0 %v296_v16 }
  0x44   :  { %270 = vmatpush3.bf16.msra.mxu0 %v297_v17 }
  0x47   :  { %214 = vmatmul.mubr.bf16.vlgmr.msra.gmra.mrb[0].mxu0 %v44_v19 }
 0x11a   :  { %v271_v20 = vpop.f32.mrb[0].mxu0 }
 0x11b   :  { %v272_v22 = vpop.f32.mrb[1].mxu0 }
 0x11c   :  { %v273_v23 = vadd.f32 %v272_v22, %v271_v20  ;;  %v274_v24 = vpop.f32.mrb[2].mxu0 }
 0x11d   :  { %v275_v25 = vpop.f32.mrb[3].mxu0 }
 0x11e   :  { %v216_v26 = vadd.f32 %v273_v23, %v238_v21 }
 0x120   :  { %221 = vst [vmem:[#allocation7] sm:$0xff] %v216_v26 }
 0x121   :  { %353 = shalt.err (!%p350_p6)
}
 0x122   :  { %s354_s2 = scalar_lea.hbm %s444_s3, 128 }
 0x123   :  { %p355_p7 = scmp.ne.s32.totalorder %s444_s3, %s354_s2  ;;  %p358_p8 = scmp.lt.u32.totalorder %s354_s2, %s444_s3 }
 0x125   :  { %p360_p9 = pnand %p358_p8, %p355_p7 }
 0x127   :  { %363 = shalt.err (!%p360_p9)
}
 0x128   :  { %231 = dma.vmem_to_hbm [thread:$0]  %s229_s12, 128, %s444_s3, [#allocation4]  }
 0x129   :  { %368 = dma.done.wait [#allocation4], 128  }
 0x12a   :  { %369 = vsyncadd [#allocation4], 4294967168 }
 0x12b   :  { %235 = vsyncpa [#allocation3], 1 }
 0x12c   :  { %236 = vsyncpa [#allocation6], 1 }
 0x12d   :  { %237 = vsyncpa [#allocation4], 1 }

</bundles_post_ra>
